<compile_context>
chip_gen: v5e
topology: v5e:2x2
jax: 0.10.0
libtpu: 0.0.40
codegen_flags: <defaults>
</compile_context>

<pallas_src>
import functools

import jax
import jax.numpy as jnp
from jax.experimental import pallas as pl
from jax.experimental.pallas import tpu as pltpu

_SUBLANE = 8


def nencoder_kernel(x_ref, w_ref, b_ref, o_ref):
    # x_ref : (TILE_B, s_len)      f32   (tiled over batch)
    # w_ref : (s_len, output_dim)  f32   (resident)
    # b_ref : (1, output_dim)      f32   (resident; L1.bias + b1.weight folded)
    # o_ref : (TILE_B, output_dim) out_dtype
    logits = jnp.dot(x_ref[...], w_ref[...], preferred_element_type=jnp.float32)
    logits = logits + b_ref[...]                      # broadcast over batch rows
    o_ref[...] = jax.nn.sigmoid(logits).astype(o_ref.dtype)


@functools.partial(jax.jit, static_argnames=("output_dim", "tile_b", "out_dtype"))
def nencoder_forward(x, l1_weight, l1_bias, b1_weight, output_dim,
                     tile_b=2048, out_dtype=jnp.float32):
    """x: [B, ...] with prod(...) == s_len (flattened like x.view(-1, s_len))."""
    B = x.shape[0]
    s_len = l1_weight.shape[1]
    h = x.reshape(B, s_len).astype(jnp.float32)       # glue: view(-1, s_len); no copy pad

    # ---- batch tile ----------------------------------------------------------
    # Whole batch in one block when it fits; otherwise a sublane-aligned tile and
    # Pallas masks the partial last block (each row is independent, so reading
    # beyond B in the last block is harmless).
    if B <= tile_b:
        tb = B                                        # block dim == full dim -> legal
    else:
        tb = max(_SUBLANE, (tile_b // _SUBLANE) * _SUBLANE)

    # ---- parameter plumbing (few KB; fused/constant-folded by XLA under jit) --
    # TODO(synk): hoist W.T / bias fold to model-load time to shave two tiny HBM ops.
    w_t = l1_weight.T.astype(jnp.float32)             # (s_len, output_dim)
    bias = (l1_bias.reshape(1, output_dim)
            + b1_weight.reshape(1, output_dim)).astype(jnp.float32)

    grid = (pl.cdiv(B, tb),)

    out_bytes = B * output_dim * jnp.dtype(out_dtype).itemsize
    cost = pl.CostEstimate(
        flops=2 * B * s_len * output_dim,
        transcendentals=B * output_dim,
        bytes_accessed=(B * s_len * 4) + (s_len * output_dim * 4)
                       + (output_dim * 4) + out_bytes,
    )

    out = pl.pallas_call(
        nencoder_kernel,
        out_shape=jax.ShapeDtypeStruct((B, output_dim), out_dtype),
        grid=grid,
        in_specs=[
            pl.BlockSpec((tb, s_len), lambda i: (i, 0)),          # x: tiled over batch
            pl.BlockSpec((s_len, output_dim), lambda i: (0, 0)),  # W^T: resident
            pl.BlockSpec((1, output_dim), lambda i: (0, 0)),      # folded bias: resident
        ],
        out_specs=pl.BlockSpec((tb, output_dim), lambda i: (i, 0)),
        compiler_params=pltpu.CompilerParams(
            dimension_semantics=("parallel",),        # shard batch blocks across TCs (v7x)
        ),
        cost_estimate=cost,
    )(h, w_t, bias)

    return out


def reference_forward(x, l1_weight, l1_bias, b1_weight, output_dim):
    B = x.shape[0]
    s_len = l1_weight.shape[1]
    h = x.reshape(B, s_len)
    return jax.nn.sigmoid(h @ l1_weight.T + l1_bias + b1_weight.reshape(1, output_dim))


if __name__ == "__main__":
    # Small shapes consistent with the module: s_len = 16, output_dim = 32, batch = 8.
    s_len = 16
    output_dim = 32
    B = 8

    key = jax.random.PRNGKey(0)
    kx, kw, kb = jax.random.split(key, 3)

    # Deterministic parameter init mirroring __init__:
    #   L1.weight : (output_dim, s_len)  -- xavier_normal_
    #   L1.bias   : (output_dim,)        -- default PyTorch uniform init
    #   b1.weight : (1, output_dim)      -- filled with 0
    xavier_std = (2.0 / (s_len + output_dim)) ** 0.5
    l1_weight = xavier_std * jax.random.normal(kw, (output_dim, s_len), dtype=jnp.float32)
    bound = 1.0 / (s_len ** 0.5)
    l1_bias = jax.random.uniform(kb, (output_dim,), minval=-bound, maxval=bound,
                                 dtype=jnp.float32)
    b1_weight = jnp.zeros((1, output_dim), dtype=jnp.float32)

    # Input: [B, s_len] (forward flattens to (-1, s_len) anyway).
    x = jax.random.normal(kx, (B, s_len), dtype=jnp.float32)

    z = nencoder_forward(x, l1_weight, l1_bias, b1_weight, output_dim)
    z = jax.block_until_ready(z)

    z_ref = reference_forward(x, l1_weight, l1_bias, b1_weight, output_dim)
    assert z.shape == (B, output_dim)
    # f32 operands + f32 accumulate -> tight tolerance (MXU default precision).
    assert jnp.allclose(z, z_ref, atol=5e-3, rtol=5e-3)

    print("KERNEL_OK")
</pallas_src>

<mosaic_0001>
module attributes {stable_mosaic.version = 11 : i64} {
  func.func @nencoder_kernel(%arg0: i32, %arg1: memref<8x16xf32, #tpu.memory_space<vmem>>, %arg2: memref<16x32xf32, #tpu.memory_space<vmem>>, %arg3: memref<1x32xf32, #tpu.memory_space<vmem>>, %arg4: memref<8x32xf32, #tpu.memory_space<vmem>>) attributes {dimension_semantics = [#tpu.dimension_semantics<parallel>], iteration_bounds = array<i64: 1>, scalar_prefetch = 0 : i64, scratch_operands = 0 : i64, tpu.core_type = #tpu.core_type<tc>, window_params = [{transform_indices = @transform_0, window_bounds = array<i64: 8, 16>}, {pipeline_mode = #tpu.pipeline_mode<synchronous>, transform_indices = @transform_1, window_bounds = array<i64: 16, 32>}, {pipeline_mode = #tpu.pipeline_mode<synchronous>, transform_indices = @transform_2, window_bounds = array<i64: 1, 32>}, {transform_indices = @transform_3, window_bounds = array<i64: 8, 32>}]} {
    %c0 = arith.constant 0 : index
    %c0_0 = arith.constant 0 : index
    %0 = vector.load %arg1[%c0, %c0_0] : memref<8x16xf32, #tpu.memory_space<vmem>>, vector<8x16xf32>
    %c0_1 = arith.constant 0 : index
    %c0_2 = arith.constant 0 : index
    %1 = vector.load %arg2[%c0_1, %c0_2] : memref<16x32xf32, #tpu.memory_space<vmem>>, vector<16x32xf32>
    %cst = arith.constant dense<0.000000e+00> : vector<8x32xf32>
    %2 = tpu.matmul %0, %1, %cst {dimension_numbers = #tpu.dot_dimension_numbers<[1], [0], [0], [1], [0, 0, 1, 1], [], []>} : vector<8x16xf32>, vector<16x32xf32>, vector<8x32xf32> -> vector<8x32xf32>
    %c0_3 = arith.constant 0 : index
    %c0_4 = arith.constant 0 : index
    %3 = vector.load %arg3[%c0_3, %c0_4] : memref<1x32xf32, #tpu.memory_space<vmem>>, vector<1x32xf32>
    %4 = vector.broadcast %3 : vector<1x32xf32> to vector<8x32xf32>
    %5 = arith.addf %2, %4 : vector<8x32xf32>
    %6 = arith.negf %5 : vector<8x32xf32>
    %7 = math.exp %6 : vector<8x32xf32>
    %cst_5 = arith.constant 1.000000e+00 : f32
    %8 = vector.broadcast %cst_5 : f32 to vector<8x32xf32>
    %9 = arith.addf %8, %7 : vector<8x32xf32>
    %10 = arith.divf %8, %9 : vector<8x32xf32>
    %c0_6 = arith.constant 0 : index
    %c0_7 = arith.constant 0 : index
    %11 = vector.load %arg4[%c0_6, %c0_7] : memref<8x32xf32, #tpu.memory_space<vmem>>, vector<8x32xf32>
    tpu.vector_store %arg4[%c0_6, %c0_7], %10 {strides = array<i32>} : memref<8x32xf32, #tpu.memory_space<vmem>>, vector<8x32xf32>,
    return
  }
  func.func @transform_0(%arg0: i32) -> (i32, i32) {
    %c0_i32 = arith.constant 0 : i32
    %c0_i32_0 = arith.constant 0 : i32
    return %arg0, %c0_i32 : i32, i32
  }
  func.func @transform_1(%arg0: i32) -> (i32, i32) {
    %c0_i32 = arith.constant 0 : i32
    %c0_i32_0 = arith.constant 0 : i32
    %c0_i32_1 = arith.constant 0 : i32
    return %c0_i32, %c0_i32_0 : i32, i32
  }
  func.func @transform_2(%arg0: i32) -> (i32, i32) {
    %c0_i32 = arith.constant 0 : i32
    %c0_i32_0 = arith.constant 0 : i32
    %c0_i32_1 = arith.constant 0 : i32
    return %c0_i32, %c0_i32_0 : i32, i32
  }
  func.func @transform_3(%arg0: i32) -> (i32, i32) {
    %c0_i32 = arith.constant 0 : i32
    %c0_i32_0 = arith.constant 0 : i32
    return %arg0, %c0_i32 : i32, i32
  }
}

</mosaic_0001>

<bundles_post_ra>
// kernel: nencoder_forward.1
= control target key start
LH: loop header
LB: loop body
LE: loop exit
PB: predicated region body
PF: predicated region fallthrough
CT: control target
= control target key end

     0   :  { %8 = vsyncpa [#allocation3], 0  ;;  %s242_s0 = inlined_call_operand.hbm [shape: f32[8,16], index: 0, kind: input, shape index: {}]   ;;  %s243_s1 = inlined_call_operand.hbm [shape: f32[16,32], index: 1, kind: input, shape index: {}]   ;;  %s244_s2 = inlined_call_operand.vmem [shape: f32[1,32], index: 2, kind: input, shape index: {}]   ;;  %s245_s3 = inlined_call_operand.hbm [shape: f32[8,32], index: 3, kind: output, shape index: {}]  }
   0x1   :  { %9 = vsyncpa [#allocation6], 0 }
   0x2   :  { %10 = vsyncpa [#allocation4], 0  ;;  %s16_s14 = sshll.u32 %s242_s0, 4  ;;  %s205_s15 = smov [#allocation2]   ;;  %s17_s14 = int_to_ptr.hbm [resolvable:$true] %s16_s14 }
   0x3   :  { %s18_s16 = sshll.u32 %s205_s15, 4  ;;  %s26_s19 = sshll.u32 %s243_s1, 4  ;;  %s19_s16 = int_to_ptr.vmem [resolvable:$true] %s18_s16  ;;  %s27_s19 = int_to_ptr.hbm [resolvable:$true] %s26_s19 }
   0x4   :  { %21 = dma.hbm_to_vmem [thread:$0]  %s17_s14, 128, %s19_s16, [#allocation3]  }
   0x5   :  { %s206_s20 = smov [#allocation5]   ;;  %s207_s22 = smov 128  }
   0x6   :  { %s28_s21 = sshll.u32 %s206_s20, 4  ;;  %s208_s23 = smov 8   ;;  %s29_s21 = int_to_ptr.vmem [resolvable:$true] %s28_s21 }
   0x7   :  { %34 = dma.hbm_to_vmem [thread:$0]  %s27_s19, 256, %s29_s21, [#allocation6], %s207_s22, %s207_s22, %s208_s23  }
   0x8   :  { %199 = dma.done.wait [#allocation3], 128  }
   0x9   :  { %200 = vsyncadd [#allocation3], 4294967168 }
   0xa   :  { %201 = dma.done.wait [#allocation6], 256  }
   0xb   :  { %202 = vsyncadd [#allocation6], 4294967040  ;;  %v47_v0 = vld [vmem:[#allocation5 + $0x8] sm:$0xff]  ;;  %v46_v1 = vld [vmem:[#allocation5] sm:$0xff]  ;;  %vm52_vm0 = vcmask 130048   ;;  %s209_s24 = smov [#allocation7]  }
   0xc   :  { %70 = vmatpush.msra.mxu0 %v47_v0  ;;  %v45_v2 = vld [vmem:[#allocation2] sm:$0xff]  ;;  %s102_s25 = sshll.u32 %s209_s24, 4  ;;  %vm95_vm4 = vcmask 261120   ;;  %s103_s25 = int_to_ptr.vmem [resolvable:$true] %s102_s25 }
   0xd   :  { %v122_v3 = vld [vmem:[%s244_s2] ss:$0 sm:$0xff]  ;;  %s104_s2 = sshll.u32 %s245_s3, 4  ;;  %s105_s2 = int_to_ptr.hbm [resolvable:$true] %s104_s2 }
   0xe   :  { %71 = vmatpush.msra.mxu0 %v46_v1 }
   0xf   :  { %115 = vmatmul.msk.f32.vlgmr.msra.gmra.mxu0 %vm52_vm0, %v45_v2 }
  0x8c   :  { %v73_v4 = vpop.f32.mrf.mxu0 }
  0x8d   :  { %v74_v5 = vadd.f32 %v122_v3, %v73_v4 }
  0x8f   :  { %v116_v6 = vmul.f32 -1.442695, %v74_v5 }
  0x91   :  { %123 = vpow2.f32 %v116_v6 }
  0x97   :  { %v124_v7 = vpop.eup %123 }
  0x98   :  { %v79_v8 = vadd.f32 1.0, %v124_v7 }
  0x9a   :  { %125 = vrcp.f32 %v79_v8  ;;  %v91_v12 = vand.u32 2147483648, %v79_v8  ;;  %v89_v14 = vand.u32 2147483647, %v79_v8  ;;  %vm85_vm2 = vweird.f32 %v79_v8 }
  0x9c   :  { %v92_v16 = vor.u32 1.1754944e-38, %v91_v12  ;;  %vm90_vm5 = vcmp.eq.f32.partialorder %v89_v14, 8.507059e+37 }
  0xa0   :  { %v126_v9 = vpop.eup %125 }
  0xa1   :  { %v81_v10 = vmul.f32 %v126_v9, %v79_v8  ;;  %vm86_vm1 = vweird.f32 %v126_v9 }
  0xa2   :  { %vm87_vm3 = vmor %vm85_vm2, %vm86_vm1 }
  0xa3   :  { %v82_v11 = vsub.f32 1.0, %v81_v10 }
  0xa5   :  { %v83_v13 = vmul.f32 %v126_v9, %v82_v11 }
  0xa7   :  { %v84_v15 = vadd.f32 %v126_v9, %v83_v13 }
  0xa9   :  { %v88_v17 = vsel %vm87_vm3, %v126_v9, %v84_v15 }
  0xaa   :  { %v93_v18 = vsel %vm90_vm5, %v92_v16, %v88_v17 }
  0xab   :  { %96 = vst.msk [vmem:[#allocation7] sm:$0xff] %vm95_vm4, %v93_v18 }
  0xac   :  { %107 = dma.vmem_to_hbm [thread:$0]  %s103_s25, 128, %s105_s2, [#allocation4]  }
  0xad   :  { %203 = dma.done.wait [#allocation4], 128  }
  0xae   :  { %204 = vsyncadd [#allocation4], 4294967168 }
  0xaf   :  { %112 = vsyncpa [#allocation3], 1 }
  0xb0   :  { %113 = vsyncpa [#allocation6], 1 }
  0xb1   :  { %114 = vsyncpa [#allocation4], 1 }

</bundles_post_ra>
